<compile_context>
chip_gen: v7x
topology: tpu7x:2x2x1
jax: 0.10.0
libtpu: 0.0.40
codegen_flags: <defaults>
</compile_context>

<pallas_src>
import math

import jax
import jax.numpy as jnp
from jax import lax
from jax.experimental import pallas as pl
from jax.experimental.pallas import tpu as pltpu


# ----------------------------------------------------------------------------
# Descriptor (deterministic, synthetic) — mirrors what __init__ extracts from
# the SegmentedTensorProduct: operand segment counts, uniform extent u, and the
# list of (path_indices, path_coefficient).
# ----------------------------------------------------------------------------
U = 128                                # uniform mode extent (lane-friendly)
NUM_SEGMENTS = (2, 3, 2, 4)            # segments per operand (x0, x1, x2, out)
PATHS = (                              # (i0, i1, i2, i3, coefficient)
    (0, 0, 0, 0, 1.0),
    (0, 1, 0, 1, 0.5),
    (1, 2, 1, 2, -1.0),
    (1, 0, 1, 3, 2.0),
    (0, 2, 0, 2, 0.25),
    (1, 1, 1, 0, 1.5),
)
MATH_DTYPE = jnp.float32


def _round_up(x, m):
    return ((x + m - 1) // m) * m


def _make_kernel(paths, num_segments, u, rs, n_chunks, bcast, math_dtype,
                 unroll):
    """Kernel body, fully unrolled over the (static) path list.

    rs       : rows processed per inner sub-chunk.
    n_chunks : rows-per-block // rs sub-chunks per grid step.
    bcast    : per-input bool; True => operand block is (1, nseg*u) (shared).
    unroll   : unroll factor for the sub-chunk fori_loop.
    """
    n3 = num_segments[3]

    # Group paths by output segment (static).
    by_out = {}
    for (a, b, c, d, coeff) in paths:
        by_out.setdefault(d, []).append((a, b, c, float(coeff)))

    # Segments of shared (batch-1) operands used by any path.
    bcast_needed = sorted({
        (op, s)
        for plist in by_out.values()
        for (a, b, c, _) in plist
        for op, s in ((0, a), (1, b), (2, c))
        if bcast[op]
    })

    def kernel(x0_ref, x1_ref, x2_ref, o_ref):
        refs = (x0_ref, x1_ref, x2_ref)

        # Hoisted: shared operand segments, loaded + sublane-broadcast once per
        # grid step (JAX does not CSE broadcast_in_dim; keep it out of loops).
        const_segs = {}
        for (op, s) in bcast_needed:
            v = refs[op][:, s * u:(s + 1) * u].astype(math_dtype)   # (1, u)
            const_segs[(op, s)] = jnp.broadcast_to(v, (rs, u))

        def chunk(r0):
            for d in range(n3):
                plist = by_out.get(d, ())
                if not plist:
                    o_ref[pl.ds(r0, rs), d * u:(d + 1) * u] = jnp.zeros(
                        (rs, u), o_ref.dtype)
                    continue

                # Per-output-segment caches bound the live-vreg working set
                # (re-loads from VMEM are cheap: 3 vld slots/cycle with slack).
                segcache = {}

                def seg(op, s):
                    key = (op, s)
                    if key not in segcache:
                        if bcast[op]:
                            segcache[key] = const_segs[key]
                        else:
                            segcache[key] = refs[op][
                                pl.ds(r0, rs),
                                s * u:(s + 1) * u].astype(math_dtype)
                    return segcache[key]

                prodcache = {}

                def prod02(a, c):
                    key = (a, c)
                    if key not in prodcache:
                        prodcache[key] = seg(0, a) * seg(2, c)
                    return prodcache[key]

                a, b, c, coeff = plist[0]
                acc = coeff * (prod02(a, c) * seg(1, b))
                for (a, b, c, coeff) in plist[1:]:
                    acc = acc + coeff * (prod02(a, c) * seg(1, b))
                # Lane-dense 128-aligned per-segment store.
                o_ref[pl.ds(r0, rs), d * u:(d + 1) * u] = acc.astype(o_ref.dtype)

        if n_chunks == 1:
            chunk(0)
        else:
            def body(ck, carry):
                chunk(pl.multiple_of(ck * rs, rs))
                return carry
            lax.fori_loop(0, n_chunks, body, 0, unroll=unroll)

    return kernel


def tensor_product_uniform_4x1d(x0, x1, x2, *, u=U, num_segments=NUM_SEGMENTS,
                                paths=PATHS, tb=2048, rs=32,
                                math_dtype=MATH_DTYPE):
    """Pallas forward for TensorProductUniform4x1d."""
    n0, n1, n2, n3 = num_segments
    assert x0.shape[-1] == n0 * u
    assert x1.shape[-1] == n1 * u
    assert x2.shape[-1] == n2 * u
    assert rs % 8 == 0

    # Broadcast leading dims (mirrors torch.broadcast_shapes + _reshape).
    lead = jnp.broadcast_shapes(x0.shape[:-1], x1.shape[:-1], x2.shape[:-1])
    k = len(lead)
    batch = max(1, math.prod(lead))

    xs = (x0, x1, x2)
    nsegs = (n0, n1, n2)

    def full_lead(x):
        xl = tuple(x.shape[:-1])
        return (1,) * (k - len(xl)) + xl

    def prefix_len(xlf):
        # Smallest j such that xlf == (1,)*j + lead[j:]; None if no such j.
        for j in range(k + 1):
            if all(d == 1 for d in xlf[:j]) and tuple(xlf[j:]) == tuple(lead[j:]):
                return j
        return None

    leads = [full_lead(x) for x in xs]

    # Pick 'outer' = prod(lead[:j]) of the largest prefix-broadcast operand so
    # that operand (and any with the same split) avoids HBM materialization.
    outer = 1
    best_bytes = -1
    for x, xlf in zip(xs, leads):
        if math.prod(xlf) == 1 or tuple(xlf) == tuple(lead):
            continue
        j = prefix_len(xlf)
        if j is None:
            continue
        nbytes = x.size * jnp.dtype(x.dtype).itemsize
        if nbytes > best_bytes:
            best_bytes = nbytes
            outer = max(1, math.prod(lead[:j]))
    inner = batch // outer

    # Classify + reshape each input to a 3-D (outer-ish, inner, nseg*u) layout.
    prepped, kinds = [], []
    for x, xlf, nseg in zip(xs, leads, nsegs):
        D = nseg * u
        if math.prod(xlf) == 1 and batch > 1:
            prepped.append(x.reshape(1, 1, D))
            kinds.append("shared")
            continue
        if tuple(xlf) == tuple(lead):
            prepped.append(x.reshape(outer, inner, D))
            kinds.append("full")
            continue
        j = prefix_len(xlf)
        if j is not None and math.prod(lead[:j]) == outer:
            prepped.append(x.reshape(1, inner, D))   # broadcast via index_map
            kinds.append("prefix")
            continue
        # TODO(synk): leading-dim broadcast patterns that do not match the
        # chosen (outer, inner) split still materialize an expanded HBM copy.
        xb = jnp.broadcast_to(x, lead + (D,))
        prepped.append(xb.reshape(outer, inner, D))
        kinds.append("full")

    bcast = tuple(kind == "shared" for kind in kinds)

    # ---- batch tile selection ----------------------------------------------
    itemsize = jnp.dtype(x0.dtype).itemsize
    streamed_row_bytes = (sum(ns for ns, kd in zip(nsegs, kinds) if kd != "shared")
                          + n3) * u * itemsize
    BLOCK_BUDGET = 28 * (1 << 20)            # double-buffered streamed blocks
    max_tb = max(rs, (BLOCK_BUDGET // (2 * streamed_row_bytes)) // rs * rs)
    tb_target = max(rs, min(tb, max_tb))

    if inner <= tb_target:
        if inner % 8 == 0 or inner < 8:
            tb_eff = inner                    # single block == full dim
        else:
            tb_eff = (inner // 8) * 8         # >=2 blocks, standard ragged tail
    else:
        tb_eff = (tb_target // rs) * rs       # multiple of rs (so rs chunks)
    tb_eff = max(1, tb_eff)
    n_inner_tiles = pl.cdiv(inner, tb_eff)

    # Guarantee >= 2 grid steps so megacore (v7x: 2 TCs) can split the work.
    if outer * n_inner_tiles < 2 and inner >= 16:
        half = pl.cdiv(inner, 2)
        cand = _round_up(half, rs)
        tb_eff = cand if cand < inner else _round_up(half, 8)
        n_inner_tiles = pl.cdiv(inner, tb_eff)

    # Sub-chunk rows (vreg working set); keep rs=32 whenever possible.
    if tb_eff % rs == 0:
        rs_eff = rs
    elif tb_eff % 8 == 0:
        rs_eff = 8
    else:
        rs_eff = tb_eff
    n_chunks = tb_eff // rs_eff
    unroll = True if n_chunks <= 8 else 4

    # ---- grid / specs -------------------------------------------------------
    # Grid order (inner_tile, outer) with outer fastest => prefix-broadcast
    # operands are DMA'd exactly once per inner tile (no re-fetch across outer).
    grid = (n_inner_tiles, outer)

    def in_spec(nseg, kind):
        D = nseg * u
        if kind == "shared":
            return pl.BlockSpec((None, 1, D), lambda t, o: (0, 0, 0))
        if kind == "prefix":
            return pl.BlockSpec((None, tb_eff, D), lambda t, o: (0, t, 0))
        return pl.BlockSpec((None, tb_eff, D), lambda t, o: (o, t, 0))

    out_spec = pl.BlockSpec((None, tb_eff, n3 * u), lambda t, o: (o, t, 0))

    bytes_accessed = int(sum(p.size for p in prepped) * itemsize
                         + batch * n3 * u * itemsize)
    cost = pl.CostEstimate(flops=int(4 * len(paths) * batch * u),
                           transcendentals=0,
                           bytes_accessed=bytes_accessed)

    kernel = _make_kernel(paths, num_segments, u, rs_eff, n_chunks, bcast,
                          math_dtype, unroll)

    out = pl.pallas_call(
        kernel,
        out_shape=jax.ShapeDtypeStruct((outer, inner, n3 * u), x0.dtype),
        grid=grid,
        in_specs=[in_spec(n0, kinds[0]), in_spec(n1, kinds[1]),
                  in_spec(n2, kinds[2])],
        out_specs=out_spec,
        compiler_params=pltpu.CompilerParams(
            dimension_semantics=("parallel", "parallel"),
            # 36 MiB: above v5e's 16 MiB scoped default, safely below v7x's
            # 64 MiB physical VMEM; block budget above keeps actual use lower.
            vmem_limit_bytes=36 * (1 << 20)),
        cost_estimate=cost,
    )(*prepped)

    return out.reshape(lead + (n3 * u,))


def _reference(x0, x1, x2, *, u=U, num_segments=NUM_SEGMENTS, paths=PATHS):
    """Pure-JAX reference for correctness checking."""
    n0, n1, n2, n3 = num_segments
    lead = jnp.broadcast_shapes(x0.shape[:-1], x1.shape[:-1], x2.shape[:-1])
    batch = max(1, math.prod(lead))
    x0 = jnp.broadcast_to(x0, lead + (x0.shape[-1],)).reshape(batch, n0, u)
    x1 = jnp.broadcast_to(x1, lead + (x1.shape[-1],)).reshape(batch, n1, u)
    x2 = jnp.broadcast_to(x2, lead + (x2.shape[-1],)).reshape(batch, n2, u)
    out = jnp.zeros((batch, n3, u), MATH_DTYPE)
    for (a, b, c, d, coeff) in paths:
        out = out.at[:, d, :].add(
            coeff * x0[:, a, :].astype(MATH_DTYPE)
                  * x1[:, b, :].astype(MATH_DTYPE)
                  * x2[:, c, :].astype(MATH_DTYPE))
    return out.astype(x0.dtype).reshape(lead + (n3 * u,))


if __name__ == "__main__":
    key = jax.random.PRNGKey(0)
    k0, k1, k2, k3, k4, k5 = jax.random.split(key, 6)
    n0, n1, n2, n3 = NUM_SEGMENTS

    # Case 1: exercises all broadcast kinds without any HBM materialization:
    #   x0 full, x1 prefix-broadcast (block index pinned to 0 along outer),
    #   x2 fully shared (single (1, nseg*u) block).
    x0 = jax.random.normal(k0, (2, 4, n0 * U), dtype=jnp.float32)
    x1 = jax.random.normal(k1, (1, 4, n1 * U), dtype=jnp.float32)
    x2 = jax.random.normal(k2, (1, 1, n2 * U), dtype=jnp.float32)
    out = jax.block_until_ready(tensor_product_uniform_4x1d(x0, x1, x2))
    ref = _reference(x0, x1, x2)
    assert out.shape == (2, 4, n3 * U), out.shape
    assert jnp.allclose(out, ref, atol=1e-5, rtol=1e-5), "case1 mismatch"

    # Case 2: flat batch, 2-tile parallel grid (megacore split), ragged tail,
    # multi-chunk inner loop, 1-D fully-shared x2 (torch unsqueeze path).
    y0 = jax.random.normal(k3, (80, n0 * U), dtype=jnp.float32)
    y1 = jax.random.normal(k4, (80, n1 * U), dtype=jnp.float32)
    y2 = jax.random.normal(k5, (n2 * U,), dtype=jnp.float32)
    out2 = jax.block_until_ready(tensor_product_uniform_4x1d(y0, y1, y2))
    ref2 = _reference(y0, y1, y2)
    assert out2.shape == (80, n3 * U), out2.shape
    assert jnp.allclose(out2, ref2, atol=1e-5, rtol=1e-5), "case2 mismatch"

    print("KERNEL_OK")
</pallas_src>

<mosaic_0001>
module attributes {stable_mosaic.version = 11 : i64} {
  func.func @kernel(%arg0: i32, %arg1: i32, %arg2: memref<1x4x256xf32, #tpu.memory_space<vmem>>, %arg3: memref<1x4x384xf32, #tpu.memory_space<vmem>>, %arg4: memref<1x1x256xf32, #tpu.memory_space<vmem>>, %arg5: memref<1x4x512xf32, #tpu.memory_space<vmem>>) attributes {dimension_semantics = [#tpu.dimension_semantics<parallel>, #tpu.dimension_semantics<parallel>], iteration_bounds = array<i64: 1, 2>, scalar_prefetch = 0 : i64, scratch_operands = 0 : i64, tpu.core_type = #tpu.core_type<tc>, window_params = [{transform_indices = @transform_0, window_bounds = array<i64: 1, 4, 256>}, {transform_indices = @transform_1, window_bounds = array<i64: 1, 4, 384>}, {pipeline_mode = #tpu.pipeline_mode<synchronous>, transform_indices = @transform_2, window_bounds = array<i64: 1, 1, 256>}, {transform_indices = @transform_3, window_bounds = array<i64: 1, 4, 512>}]} {
    %c0 = arith.constant 0 : index
    %c0_0 = arith.constant 0 : index
    %c0_1 = arith.constant 0 : index
    %0 = vector.load %arg4[%c0, %c0_0, %c0_1] : memref<1x1x256xf32, #tpu.memory_space<vmem>>, vector<1x1x128xf32>
    %1 = vector.shape_cast %0 : vector<1x1x128xf32> to vector<1x128xf32>
    %2 = vector.shape_cast %1 : vector<1x128xf32> to vector<1x128xf32>
    %3 = vector.broadcast %2 : vector<1x128xf32> to vector<4x128xf32>
    %c0_2 = arith.constant 0 : index
    %c0_3 = arith.constant 0 : index
    %c128 = arith.constant 128 : index
    %4 = vector.load %arg4[%c0_2, %c0_3, %c128] : memref<1x1x256xf32, #tpu.memory_space<vmem>>, vector<1x1x128xf32>
    %5 = vector.shape_cast %4 : vector<1x1x128xf32> to vector<1x128xf32>
    %6 = vector.shape_cast %5 : vector<1x128xf32> to vector<1x128xf32>
    %7 = vector.broadcast %6 : vector<1x128xf32> to vector<4x128xf32>
    %c0_4 = arith.constant 0 : index
    %c0_5 = arith.constant 0 : index
    %c0_6 = arith.constant 0 : index
    %8 = vector.load %arg2[%c0_4, %c0_5, %c0_6] : memref<1x4x256xf32, #tpu.memory_space<vmem>>, vector<1x4x128xf32>
    %9 = vector.shape_cast %8 : vector<1x4x128xf32> to vector<4x128xf32>
    %10 = arith.mulf %9, %3 : vector<4x128xf32>
    %c0_7 = arith.constant 0 : index
    %c0_8 = arith.constant 0 : index
    %c0_9 = arith.constant 0 : index
    %11 = vector.load %arg3[%c0_7, %c0_8, %c0_9] : memref<1x4x384xf32, #tpu.memory_space<vmem>>, vector<1x4x128xf32>
    %12 = vector.shape_cast %11 : vector<1x4x128xf32> to vector<4x128xf32>
    %13 = arith.mulf %10, %12 : vector<4x128xf32>
    %cst = arith.constant 1.000000e+00 : f32
    %14 = vector.broadcast %cst : f32 to vector<4x128xf32>
    %15 = arith.mulf %14, %13 : vector<4x128xf32>
    %c0_10 = arith.constant 0 : index
    %c0_11 = arith.constant 0 : index
    %c128_12 = arith.constant 128 : index
    %16 = vector.load %arg2[%c0_10, %c0_11, %c128_12] : memref<1x4x256xf32, #tpu.memory_space<vmem>>, vector<1x4x128xf32>
    %17 = vector.shape_cast %16 : vector<1x4x128xf32> to vector<4x128xf32>
    %18 = arith.mulf %17, %7 : vector<4x128xf32>
    %c0_13 = arith.constant 0 : index
    %c0_14 = arith.constant 0 : index
    %c128_15 = arith.constant 128 : index
    %19 = vector.load %arg3[%c0_13, %c0_14, %c128_15] : memref<1x4x384xf32, #tpu.memory_space<vmem>>, vector<1x4x128xf32>
    %20 = vector.shape_cast %19 : vector<1x4x128xf32> to vector<4x128xf32>
    %21 = arith.mulf %18, %20 : vector<4x128xf32>
    %cst_16 = arith.constant 1.500000e+00 : f32
    %22 = vector.broadcast %cst_16 : f32 to vector<4x128xf32>
    %23 = arith.mulf %22, %21 : vector<4x128xf32>
    %24 = arith.addf %15, %23 : vector<4x128xf32>
    %c0_17 = arith.constant 0 : index
    %c0_18 = arith.constant 0 : index
    %c0_19 = arith.constant 0 : index
    %25 = vector.load %arg5[%c0_17, %c0_18, %c0_19] : memref<1x4x512xf32, #tpu.memory_space<vmem>>, vector<1x4x128xf32>
    %26 = vector.shape_cast %25 : vector<1x4x128xf32> to vector<4x128xf32>
    %27 = vector.shape_cast %24 : vector<4x128xf32> to vector<1x4x128xf32>
    tpu.vector_store %arg5[%c0_17, %c0_18, %c0_19], %27 {strides = array<i32>} : memref<1x4x512xf32, #tpu.memory_space<vmem>>, vector<1x4x128xf32>,
    %c0_20 = arith.constant 0 : index
    %c0_21 = arith.constant 0 : index
    %c0_22 = arith.constant 0 : index
    %28 = vector.load %arg2[%c0_20, %c0_21, %c0_22] : memref<1x4x256xf32, #tpu.memory_space<vmem>>, vector<1x4x128xf32>
    %29 = vector.shape_cast %28 : vector<1x4x128xf32> to vector<4x128xf32>
    %30 = arith.mulf %29, %3 : vector<4x128xf32>
    %c0_23 = arith.constant 0 : index
    %c0_24 = arith.constant 0 : index
    %c128_25 = arith.constant 128 : index
    %31 = vector.load %arg3[%c0_23, %c0_24, %c128_25] : memref<1x4x384xf32, #tpu.memory_space<vmem>>, vector<1x4x128xf32>
    %32 = vector.shape_cast %31 : vector<1x4x128xf32> to vector<4x128xf32>
    %33 = arith.mulf %30, %32 : vector<4x128xf32>
    %cst_26 = arith.constant 5.000000e-01 : f32
    %34 = vector.broadcast %cst_26 : f32 to vector<4x128xf32>
    %35 = arith.mulf %34, %33 : vector<4x128xf32>
    %c0_27 = arith.constant 0 : index
    %c0_28 = arith.constant 0 : index
    %c128_29 = arith.constant 128 : index
    %36 = vector.load %arg5[%c0_27, %c0_28, %c128_29] : memref<1x4x512xf32, #tpu.memory_space<vmem>>, vector<1x4x128xf32>
    %37 = vector.shape_cast %36 : vector<1x4x128xf32> to vector<4x128xf32>
    %38 = vector.shape_cast %35 : vector<4x128xf32> to vector<1x4x128xf32>
    tpu.vector_store %arg5[%c0_27, %c0_28, %c128_29], %38 {strides = array<i32>} : memref<1x4x512xf32, #tpu.memory_space<vmem>>, vector<1x4x128xf32>,
    %c0_30 = arith.constant 0 : index
    %c0_31 = arith.constant 0 : index
    %c128_32 = arith.constant 128 : index
    %39 = vector.load %arg2[%c0_30, %c0_31, %c128_32] : memref<1x4x256xf32, #tpu.memory_space<vmem>>, vector<1x4x128xf32>
    %40 = vector.shape_cast %39 : vector<1x4x128xf32> to vector<4x128xf32>
    %41 = arith.mulf %40, %7 : vector<4x128xf32>
    %c0_33 = arith.constant 0 : index
    %c0_34 = arith.constant 0 : index
    %c256 = arith.constant 256 : index
    %42 = vector.load %arg3[%c0_33, %c0_34, %c256] : memref<1x4x384xf32, #tpu.memory_space<vmem>>, vector<1x4x128xf32>
    %43 = vector.shape_cast %42 : vector<1x4x128xf32> to vector<4x128xf32>
    %44 = arith.mulf %41, %43 : vector<4x128xf32>
    %cst_35 = arith.constant -1.000000e+00 : f32
    %45 = vector.broadcast %cst_35 : f32 to vector<4x128xf32>
    %46 = arith.mulf %45, %44 : vector<4x128xf32>
    %c0_36 = arith.constant 0 : index
    %c0_37 = arith.constant 0 : index
    %c0_38 = arith.constant 0 : index
    %47 = vector.load %arg2[%c0_36, %c0_37, %c0_38] : memref<1x4x256xf32, #tpu.memory_space<vmem>>, vector<1x4x128xf32>
    %48 = vector.shape_cast %47 : vector<1x4x128xf32> to vector<4x128xf32>
    %49 = arith.mulf %48, %3 : vector<4x128xf32>
    %50 = arith.mulf %49, %43 : vector<4x128xf32>
    %cst_39 = arith.constant 2.500000e-01 : f32
    %51 = vector.broadcast %cst_39 : f32 to vector<4x128xf32>
    %52 = arith.mulf %51, %50 : vector<4x128xf32>
    %53 = arith.addf %46, %52 : vector<4x128xf32>
    %c0_40 = arith.constant 0 : index
    %c0_41 = arith.constant 0 : index
    %c256_42 = arith.constant 256 : index
    %54 = vector.load %arg5[%c0_40, %c0_41, %c256_42] : memref<1x4x512xf32, #tpu.memory_space<vmem>>, vector<1x4x128xf32>
    %55 = vector.shape_cast %54 : vector<1x4x128xf32> to vector<4x128xf32>
    %56 = vector.shape_cast %53 : vector<4x128xf32> to vector<1x4x128xf32>
    tpu.vector_store %arg5[%c0_40, %c0_41, %c256_42], %56 {strides = array<i32>} : memref<1x4x512xf32, #tpu.memory_space<vmem>>, vector<1x4x128xf32>,
    %c0_43 = arith.constant 0 : index
    %c0_44 = arith.constant 0 : index
    %c128_45 = arith.constant 128 : index
    %57 = vector.load %arg2[%c0_43, %c0_44, %c128_45] : memref<1x4x256xf32, #tpu.memory_space<vmem>>, vector<1x4x128xf32>
    %58 = vector.shape_cast %57 : vector<1x4x128xf32> to vector<4x128xf32>
    %59 = arith.mulf %58, %7 : vector<4x128xf32>
    %c0_46 = arith.constant 0 : index
    %c0_47 = arith.constant 0 : index
    %c0_48 = arith.constant 0 : index
    %60 = vector.load %arg3[%c0_46, %c0_47, %c0_48] : memref<1x4x384xf32, #tpu.memory_space<vmem>>, vector<1x4x128xf32>
    %61 = vector.shape_cast %60 : vector<1x4x128xf32> to vector<4x128xf32>
    %62 = arith.mulf %59, %61 : vector<4x128xf32>
    %cst_49 = arith.constant 2.000000e+00 : f32
    %63 = vector.broadcast %cst_49 : f32 to vector<4x128xf32>
    %64 = arith.mulf %63, %62 : vector<4x128xf32>
    %c0_50 = arith.constant 0 : index
    %c0_51 = arith.constant 0 : index
    %c384 = arith.constant 384 : index
    %65 = vector.load %arg5[%c0_50, %c0_51, %c384] : memref<1x4x512xf32, #tpu.memory_space<vmem>>, vector<1x4x128xf32>
    %66 = vector.shape_cast %65 : vector<1x4x128xf32> to vector<4x128xf32>
    %67 = vector.shape_cast %64 : vector<4x128xf32> to vector<1x4x128xf32>
    tpu.vector_store %arg5[%c0_50, %c0_51, %c384], %67 {strides = array<i32>} : memref<1x4x512xf32, #tpu.memory_space<vmem>>, vector<1x4x128xf32>,
    return
  }
  func.func @transform_0(%arg0: i32, %arg1: i32) -> (i32, i32, i32) {
    %c0_i32 = arith.constant 0 : i32
    %c0_i32_0 = arith.constant 0 : i32
    return %arg1, %arg0, %c0_i32 : i32, i32, i32
  }
  func.func @transform_1(%arg0: i32, %arg1: i32) -> (i32, i32, i32) {
    %c0_i32 = arith.constant 0 : i32
    %c0_i32_0 = arith.constant 0 : i32
    %c0_i32_1 = arith.constant 0 : i32
    return %c0_i32, %arg0, %c0_i32_0 : i32, i32, i32
  }
  func.func @transform_2(%arg0: i32, %arg1: i32) -> (i32, i32, i32) {
    %c0_i32 = arith.constant 0 : i32
    %c0_i32_0 = arith.constant 0 : i32
    %c0_i32_1 = arith.constant 0 : i32
    %c0_i32_2 = arith.constant 0 : i32
    return %c0_i32, %c0_i32_0, %c0_i32_1 : i32, i32, i32
  }
  func.func @transform_3(%arg0: i32, %arg1: i32) -> (i32, i32, i32) {
    %c0_i32 = arith.constant 0 : i32
    %c0_i32_0 = arith.constant 0 : i32
    return %arg1, %arg0, %c0_i32 : i32, i32, i32
  }
}

</mosaic_0001>

<bundles_post_ra>
// kernel: tpu_custom_call.1
= control target key start
LH: loop header
LB: loop body
LE: loop exit
PB: predicated region body
PF: predicated region fallthrough
CT: control target
= control target key end

     0   :  { %8 = vsyncpa [#allocation3], 0  ;;  %s873_s0 = inlined_call_operand.hbm [shape: f32[2,4,256], index: 0, kind: input, shape index: {}]   ;;  %s874_s1 = inlined_call_operand.hbm [shape: f32[1,4,384], index: 1, kind: input, shape index: {}]   ;;  %s875_s2 = inlined_call_operand.vmem [shape: f32[1,1,256], index: 2, kind: input, shape index: {}]   ;;  %s876_s3 = inlined_call_operand.hbm [shape: f32[2,4,512], index: 3, kind: output, shape index: {}]  }
   0x1   :  { %10 = vsyncpa [#allocation3 + $0x1], 0 }
   0x2   :  { %11 = vsyncpa [#allocation6], 0 }
   0x3   :  { %12 = vsyncpa [#allocation4], 0 }
   0x4   :  { %14 = vsyncpa [#allocation4 + $0x1], 0  ;;  %s650_s12 = smov 0   ;;  %s652_s13 = smov 0  }
   0x5   :  { %s654_s14 = smov 0   ;;  %s656_s15 = smov 0  }
   0x6   :  { %s658_s16 = smov 0   ;;  %s660_s17 = smov 0  }
   0x7 LB: > { %s387_s18 = sadd.s32 4294967295, %s625_s17   ;;  %s388_s19 = sadd.s32 4294967294, %s625_s17   ;;  %s625_s17 = sphi %s660_s17, %s20_s17   ;;  %s621_s16 = sphi %s658_s16, %s901_s16   ;;  %s617_s15 = sphi %s656_s15, %s900_s15   ;;  %s613_s14 = sphi %s654_s14, %s899_s14   ;;  %s609_s13 = sphi %s652_s13, %s898_s13   ;;  %s605_s12 = sphi %s650_s12, %s897_s12  }
   0x8   : > { %p54_p0 = scmp.ne.s32.totalorder %s609_s13, %s605_s12  ;;  %p684_p1 = scmp.eq.s32.totalorder %s387_s18, 0 }
   0x9   : > { %p688_p2 = scmp.eq.s32.totalorder %s387_s18, 1  ;;  %p133_p3 = scmp.eq.s32.totalorder %s388_s19, 1 }
   0xa   : > { %s881_s20 = scalar_select %p684_p1, 1, 0 }
   0xb   : > { %s882_s21 = scalar_select %p688_p2, 1, 0 }
   0xc   : > { %p694_p4 = por %p684_p1, %p54_p0  ;;  %p389_p5 = scmp.ge.s32.totalorder %s625_s17, 1 }
   0xd   : > { %p699_p6 = por %p133_p3, %p54_p0  ;;  %p140_p7 = scmp.lt.s32.totalorder %s625_s17, 3 }
   0xe   : > { %s883_s22 = scalar_select %p694_p4, 1, 0 }
   0xf   : > { %s884_s23 = scalar_select %p699_p6, 1, 0 }
  0x10   : > { %p704_p8 = pnand %p389_p5, %p140_p7  ;;  %s627_s25 = smov [#allocation5]  }
  0x11   : > { %s156_s26 = sshll.u32 %s627_s25, 4  ;;  %s29_s28 = sadd.s32 1, %s621_s16  ;;  %s157_s26 = int_to_ptr.vmem [resolvable:$true] %s156_s26 }
  0x12   : > { %s885_s24 = scalar_select %p704_p8, 1, 0 }
  0x13   : > { %p416_p10 = pneg %p704_p8  ;;  %s41_s29 = sadd.s32 1, %s613_s14 }
  0x14   : > { %p719_p12 = scmp.ge.s32.totalorder %s29_s28, 2  ;;  %s481_s6 = scalar_lea.hbm %s874_s1, 192 }
  0x15   : > { %p713_p11 = pnand %p416_p10, %p684_p1  ;;  %p482_p13 = scmp.ne.s32.totalorder %s874_s1, %s481_s6 }
  0x16   : > { %s887_s30 = scalar_select %p719_p12, 1, 0 }
  0x17   : > { %p483_p0 = pneg %p713_p11  ;;  %p488_p7 = scmp.lt.u32.totalorder %s481_s6, %s874_s1 }
  0x19   : > { %p484_p3 = pnand %p483_p0, %p482_p13 }
  0x1b   : > { %p485_p5 = pneg %p484_p3 }
  0x1d   : > { %p490_p10 = pnand %p488_p7, %p485_p5 }
  0x1f   : > { %493 = shalt.err (!%p490_p10)
}
  0x20   : > { %s494_s11 = scalar_lea.vmem %s157_s26, 192  ;;  %p502_p4 = scmp.lt.s32.totalorder %s157_s26, %s157_s26 }
  0x21   : > { %p495_p9 = scmp.ne.s32.totalorder %s157_s26, %s494_s11  ;;  %p503_p8 = scmp.lt.s32.totalorder %s494_s11, %s494_s11 }
  0x23   : > { %p497_p6 = pnand %p495_p9, %p483_p0  ;;  %p504_p2 = por %p503_p8, %p502_p4 }
  0x25   : > { %p498_p1 = pneg %p497_p6 }
  0x27   : > { %p505_p12 = pnand %p504_p2, %p498_p1 }
  0x29   : > { %508 = shalt.err (!%p505_p12)
}
  0x2a   : > { %419 = dma.hbm_to_vmem [thread:$0]  (!%p713_p11), %s874_s1, 192, %s157_s26, [#allocation6]  }
  0x2b   : > { %p888_p4 = scmp.ne.s32.totalorder %s887_s30, 0  ;;  %p48_p1 = scmp.ne.s32.totalorder %s613_s14, %s609_s13 }
  0x2c   : > { %p49_p2 = scmp.eq.s32.totalorder %s625_s17, 0  ;;  %p429_p6 = scmp.lt.s32.totalorder %s625_s17, 2 }
  0x2d   : > { %s903_s28 = smov (%p888_p4, %s29_s28), 0  ;;  %p889_p12 = scmp.ne.s32.totalorder %s882_s21, 0 }
  0x2e   : > { %s36_s25 = ssub.s32 %s621_s16, %s903_s28  ;;  %p50_p9 = por %p49_p2, %p48_p1 }
  0x2f   : > { %p39_p8 = scmp.eq.s32.totalorder %s36_s25, 0  ;;  %p751_p13 = por %p889_p12, %p48_p1 }
  0x30   : > { %s170_s4 = sand.u32 1, %s613_s14   ;;  %s406_s30 = sshll.u32 %s621_s16, 7 }
  0x31   : > { %s759_s5 = scalar_select %p39_p8, %s613_s14, %s41_s29  }
  0x32   : > { %s392_s26 = sshll.u32 %s170_s4, 3  ;;  %s765_s8 = scalar_lea.hbm %s873_s0, %s406_s30 }
  0x33   : > { %s174_s21 = scalar_lea.vmem [#allocation2], %s392_s26  ;;  %p769_p11 = pnand %p429_p6, %p50_p9 }
  0x34   : > { %s184_s9 = sshll.u32 %s174_s21, 4  ;;  %s171_s29 = scalar_lea.sflag [#allocation3], %s170_s4  ;;  %s767_s9 = int_to_ptr.vmem [resolvable:$true] %s184_s9 }
  0x35   : > { %s509_s11 = scalar_lea.hbm %s765_s8, 128  ;;  %p511_p3 = pneg %p769_p11 }
  0x36   : > { %p510_p0 = scmp.ne.s32.totalorder %s765_s8, %s509_s11  ;;  %s514_s25 = scalar_lea.hbm %s873_s0, 256 }
  0x37   : > { %p515_p10 = scmp.lt.u32.totalorder %s765_s8, %s873_s0  ;;  %p516_p4 = scmp.lt.u32.totalorder %s514_s25, %s509_s11 }
  0x38   : > { %p512_p5 = pnand %p511_p3, %p510_p0  ;;  %p518_p2 = scmp.lt.u32.totalorder %s509_s11, %s765_s8 }
  0x39   : > { %p517_p1 = por %p516_p4, %p515_p10 }
  0x3a   : > { %p513_p7 = pneg %p512_p5 }
  0x3b   : > { %p519_p6 = por %p518_p2, %p517_p1 }
  0x3d   : > { %p520_p8 = pnand %p519_p6, %p513_p7 }
  0x3f   : > { %523 = shalt.err (!%p520_p8)
}
  0x40   : > { %s524_s4 = scalar_lea.vmem %s767_s9, 128  ;;  %s628_s6 = smov [#allocation2]  }
  0x41   : > { %p525_p9 = scmp.ne.s32.totalorder %s767_s9, %s524_s4  ;;  %s529_s7 = sshll.u32 %s628_s6, 4  ;;  %s530_s7 = int_to_ptr.vmem [resolvable:$false] %s529_s7 }
  0x42   : > { %s531_s21 = scalar_lea.vmem %s530_s7, 256  ;;  %p532_p5 = scmp.lt.s32.totalorder %s767_s9, %s530_s7 }
  0x43   : > { %p527_p12 = pnand %p525_p9, %p511_p3  ;;  %p533_p10 = scmp.lt.s32.totalorder %s531_s21, %s524_s4 }
  0x45   : > { %p528_p0 = pneg %p527_p12  ;;  %p534_p4 = por %p533_p10, %p532_p5 }
  0x47   : > { %p535_p1 = pnand %p534_p4, %p528_p0 }
  0x49   : > { %538 = shalt.err (!%p535_p1)
}
  0x4a   : > { %423 = dma.hbm_to_vmem [thread:$0]  (!%p769_p11), %s765_s8, 128, %s767_s9, %s171_s29  }
  0x4b   : > { %p892_p7 = scmp.ne.s32.totalorder %s885_s24, 0 }
  0x4c   : > { %s801_s11 = sand.u32 (!%p892_p7), 1, %s609_s13   ;;  %p893_p3 = scmp.ne.s32.totalorder (!%p892_p7), %s883_s22, 0 }
  0x4d   : > { %193 = sbr.rel (%p892_p7) target bundleno = 117 (0x75), region = 32  ;;  %s396_s18 = sshll.u32 (!%p892_p7), %s801_s11, 3 }
  0x4e   : > { %s196_s19 = scalar_lea.sflag (!%p892_p7), [#allocation3], %s801_s11  ;;  %s199_s25 = scalar_lea.vmem (!%p892_p7), [#allocation2], %s396_s18 }
  0x54   : > { %592 = dma.done.wait (%p893_p3), %s196_s19, 128  }
  0x55   : > { %594 = vsyncadd (%p893_p3), %s196_s19, 4294967168  ;;  %p894_p2 = scmp.ne.s32.totalorder %s881_s20, 0 }
  0x57   : > { %596 = dma.done.wait (%p894_p2), [#allocation6], 192  }
  0x58   : > { %598 = vsyncadd (%p894_p2), [#allocation6], 4294967104  ;;  %s398_s24 = sshll.u32 %s801_s11, 4  ;;  %v399_v0 = vld [vmem:[%s875_s2] ss:$0 sm:$0xff]  ;;  %s407_s26 = sshll.u32 %s617_s15, 8 }
  0x59   : > { %v400_v1 = vld [vmem:[%s875_s2 + $0x1] ss:$0 sm:$0xff]  ;;  %v242_v4 = vld [vmem:[#allocation5] sm:$0xf]  ;;  %v244_v5 = vld [vmem:[%s199_s25 + $0x4] sm:$0xf]  ;;  %s826_s6 = scalar_lea.hbm %s876_s3, %s407_s26 }
  0x5a   : > { %v240_v2 = vld [vmem:[%s199_s25] sm:$0xf]  ;;  %v246_v6 = vld [vmem:[#allocation5 + $0x4] sm:$0xf]  ;;  %v245_v7 = vmul.f32 %v400_v1, %v244_v5  ;;  %v257_v10 = vld [vmem:[%s199_s25 + $0x4] sm:$0xf] }
  0x5b   : > { %v241_v3 = vmul.f32 %v399_v0, %v240_v2  ;;  %v251_v8 = vld [vmem:[%s199_s25] sm:$0xf]  ;;  %v253_v9 = vld [vmem:[#allocation5 + $0x4] sm:$0xf]  ;;  %v258_v12 = vmul.f32 %v400_v1, %v257_v10  ;;  %v259_v13 = vld [vmem:[#allocation5 + $0x8] sm:$0xf] }
  0x5c   : > { %v252_v11 = vmul.f32 %v399_v0, %v251_v8  ;;  %v262_v14 = vld [vmem:[%s199_s25] sm:$0xf]  ;;  %v268_v15 = vld [vmem:[%s199_s25 + $0x4] sm:$0xf]  ;;  %v247_v17 = vmul.f32 %v246_v6, %v245_v7  ;;  %v270_v20 = vld [vmem:[#allocation5] sm:$0xf] }
  0x5d   : > { %v243_v16 = vmul.f32 %v242_v4, %v241_v3  ;;  %v263_v18 = vmul.f32 %v399_v0, %v262_v14  ;;  %v269_v19 = vmul.f32 %v400_v1, %v268_v15  ;;  %v260_v22 = vmul.f32 %v259_v13, %v258_v12  ;;  %s225_s20 = scalar_lea.vmem [#allocation7], %s398_s24  ;;  %s275_s7 = scalar_lea.sflag [#allocation4], %s801_s11 }
  0x5e   : > { %v254_v21 = vmul.f32 %v253_v9, %v252_v11  ;;  %v248_v23 = vmul.f32 1.5, %v247_v17  ;;  %s291_s22 = sshll.u32 %s225_s20, 4  ;;  %s629_s21 = smov [#allocation7]   ;;  %s821_s22 = int_to_ptr.vmem [resolvable:$true] %s291_s22 }
  0x5f   : > { %v264_v24 = vmul.f32 %v263_v18, %v259_v13  ;;  %v271_v25 = vmul.f32 %v270_v20, %v269_v19  ;;  %v261_v27 = vmul.f32 -1.0, %v260_v22  ;;  %s539_s15 = scalar_lea.vmem %s821_s22, 256  ;;  %s543_s18 = sshll.u32 %s629_s21, 4  ;;  %s544_s18 = int_to_ptr.vmem [resolvable:$false] %s543_s18 }
  0x60   : > { %v255_v26 = vmul.f32 0.5, %v254_v21  ;;  %v249_v28 = vadd.f32 %v248_v23, %v243_v16  ;;  %p540_p11 = scmp.ne.s32.totalorder %s821_s22, %s539_s15  ;;  %s545_s19 = scalar_lea.vmem %s544_s18, 512 }
  0x61   : > { %v265_v29 = vmul.f32 0.25, %v264_v24  ;;  %v272_v30 = vmul.f32 2.0, %v271_v25  ;;  %p546_p9 = scmp.lt.s32.totalorder %s821_s22, %s544_s18  ;;  %p547_p12 = scmp.lt.s32.totalorder %s545_s19, %s539_s15 }
  0x62   : > { %256 = vst [vmem:[%s225_s20 + $0x4] sm:$0xf] %v255_v26  ;;  %250 = vst [vmem:[%s225_s20] sm:$0xf] %v249_v28  ;;  %p541_p6 = pnand %p540_p11, %p751_p13 }
  0x63   : > { %v266_v31 = vadd.f32 %v265_v29, %v261_v27  ;;  %273 = vst [vmem:[%s225_s20 + $0xc] sm:$0xf] %v272_v30  ;;  %p548_p0 = por %p547_p12, %p546_p9 }
  0x64   : > { %p542_p8 = pneg %p541_p6 }
  0x65   : > { %267 = vst [vmem:[%s225_s20 + $0x8] sm:$0xf] %v266_v31 }
  0x66   : > { %p549_p5 = pnand %p548_p0, %p542_p8 }
  0x68   : > { %552 = shalt.err (!%p549_p5)
}
  0x69   : > { %s553_s11 = scalar_lea.hbm %s826_s6, 256  ;;  %s557_s8 = scalar_lea.hbm %s876_s3, 512 }
  0x6a   : > { %p554_p10 = scmp.ne.s32.totalorder %s826_s6, %s553_s11  ;;  %p558_p7 = scmp.lt.u32.totalorder %s826_s6, %s876_s3 }
  0x6b   : > { %p559_p3 = scmp.lt.u32.totalorder %s557_s8, %s553_s11  ;;  %p561_p11 = scmp.lt.u32.totalorder %s553_s11, %s826_s6 }
  0x6c   : > { %p555_p4 = pnand %p554_p10, %p751_p13 }
  0x6d   : > { %p560_p2 = por %p559_p3, %p558_p7 }
  0x6e   : > { %p556_p1 = pneg %p555_p4 }
  0x6f   : > { %p562_p6 = por %p561_p11, %p560_p2 }
  0x71   : > { %p563_p8 = pnand %p562_p6, %p556_p1 }
  0x73   : > { %566 = shalt.err (!%p563_p8)
}
  0x74   : > { %414 = dma.vmem_to_hbm [thread:$0]  (%p751_p13), %s821_s22, 256, %s826_s6, %s275_s7  }
  0x75 PF: > { %s303_s29 = sand.u32 1, %s605_s12   ;;  %p895_p9 = scmp.ne.s32.totalorder %s884_s23, 0 }
  0x76   : > { %p896_p12 = scmp.ge.s32.totalorder %s625_s17, 2  ;;  %s304_s20 = scalar_lea.sflag [#allocation4], %s303_s29 }
  0x78   : > { %p425_p0 = pnand %p896_p12, %p895_p9 }
  0x7a   : > { %600 = dma.done.wait (!%p425_p0), %s304_s20, 256  }
  0x7b   : > { %602 = vsyncadd (!%p425_p0), %s304_s20, 4294967040  ;;  %s20_s17 = sadd.s32 1, %s625_s17   ;;  %s897_s12 = smov %s609_s13 }
  0x7c   : > { %p17_p5 = scmp.ge.s32.totalorder %s20_s17, 4   ;;  %s898_s13 = smov %s613_s14 }
  0x7d   : > { %s899_s14 = smov %s759_s5  ;;  %s900_s15 = smov %s621_s16 }
  0x7e   : > { %s901_s16 = smov %s903_s28  ;;  %19 = sbr.rel (!%p17_p5) target bundleno = 7 (0x7), region = 82 }
  0x85   :  { %309 = vsyncpa [#allocation3], 1 }
  0x86   :  { %311 = vsyncpa [#allocation3 + $0x1], 1 }
  0x87   :  { %312 = vsyncpa [#allocation6], 1 }
  0x88   :  { %313 = vsyncpa [#allocation4], 1 }
  0x89   :  { %315 = vsyncpa [#allocation4 + $0x1], 1 }

</bundles_post_ra>
